<compile_context>
chip_gen: v7x
topology: tpu7x:2x2x1
jax: 0.10.0
libtpu: 0.0.40
codegen_flags: <defaults>
</compile_context>

<pallas_src>
import jax
import jax.numpy as jnp
from jax.experimental import pallas as pl
from jax.experimental.pallas import tpu as pltpu

# Packed parameter layout (everything padded to 128 lanes):
#   w_slab[  0:  8, :]  rows 0:4, cols 0:64  = Linear(4,64).W^T   (rows 4:8 zero)
#   w_slab[  8:136, :]  rows 0:64, cols 0:64 = Linear(64,64).W^T
#   w_slab[136:264, :]  rows 0:64, cols 0:2  = actor.W^T, col 2 = critic.W^T
#   b_slab[0, 0:64] = b1, b_slab[1, 0:64] = b2, b_slab[2, 0:3] = [ba | bc]
W_ROWS = 264

SINGLE_TILE_MAX = 2048   # below this: one grid step (per-step overhead dominates)
MAX_TILE = 4096          # above SINGLE_TILE_MAX: even #steps, each <= MAX_TILE rows


def actor_critic_kernel(x_ref, w_ref, b_ref, logits_ref, value_ref, x8_ref):
    # In-kernel K padding 4 -> 8 (padding lanes must be exact zeros so the
    # zero weight rows never see stale-VMEM NaNs: 0 * NaN = NaN).
    x8_ref[...] = jnp.zeros_like(x8_ref)
    x8_ref[:, 0:4] = x_ref[...]
    x = x8_ref[...]                       # [T, 8]

    w1 = w_ref[0:8, :]                    # [8, 128]   (row slices are 8-aligned)
    w2 = w_ref[8:136, :]                  # [128, 128]
    wh = w_ref[136:264, :]                # [128, 128] fused actor|critic head
    b1 = b_ref[0:1, :]                    # [1, 128]
    b2 = b_ref[1:2, :]
    bh = b_ref[2:3, :]

    # sync: Linear(4,64) + ReLU   (lanes 64:128 stay exactly 0)
    h1 = jnp.maximum(jnp.dot(x, w1, preferred_element_type=jnp.float32) + b1, 0.0)
    # sync: Linear(64,64) + ReLU  (lanes 64:128 stay exactly 0)
    h2 = jnp.maximum(jnp.dot(h1, w2, preferred_element_type=jnp.float32) + b2, 0.0)
    # fused actor/critic heads; store only the live lanes (writeback-bound, so
    # the masked narrow stores are free filler).
    head = jnp.dot(h2, wh, preferred_element_type=jnp.float32) + bh   # [T, 128]
    logits_ref[...] = head[:, 0:2]
    value_ref[...] = head[:, 2:3]


def _round_up(n, m):
    return (n + m - 1) // m * m


def _choose_tiling(b_pad):
    """Few, big grid steps; even step count when tiling (v7x dual-TC)."""
    if b_pad <= SINGLE_TILE_MAX:
        return b_pad, 1
    steps = max(2, pl.cdiv(b_pad, MAX_TILE))
    steps += steps % 2                       # even so both v7x TCs get work
    tile_b = _round_up(pl.cdiv(b_pad, steps), 8)
    steps = pl.cdiv(b_pad, tile_b)           # ragged final block is allowed
    return tile_b, steps


def actor_critic_forward(state, packed_params):
    """state: [B, 4] float32 -> (logits [B, 2], value [B, 1])."""
    w_slab, b_slab = packed_params
    B = state.shape[0]
    x = state.astype(jnp.float32)

    b_pad = _round_up(max(B, 1), 8)
    if b_pad != B:                            # <= 7 zero rows; usually skipped
        x = jnp.pad(x, ((0, b_pad - B), (0, 0)))
    tile_b, steps = _choose_tiling(b_pad)

    flops = 2 * b_pad * (8 * 128 + 128 * 128 + 128 * 128)
    bytes_accessed = (b_pad * 4 + (W_ROWS + 8) * 128 + b_pad * 3) * 4

    logits, value = pl.pallas_call(
        actor_critic_kernel,
        out_shape=(
            jax.ShapeDtypeStruct((b_pad, 2), jnp.float32),
            jax.ShapeDtypeStruct((b_pad, 1), jnp.float32),
        ),
        grid_spec=pl.GridSpec(
            grid=(steps,),
            in_specs=[
                # activations: tiled over the batch, pipelined; last dim (4)
                # equals the full array dim, so no host-side K padding needed
                pl.BlockSpec((tile_b, 4), lambda i: (i, 0)),
                # weights / biases: constant index_map -> VMEM-resident
                pl.BlockSpec((W_ROWS, 128), lambda i: (0, 0)),
                pl.BlockSpec((8, 128), lambda i: (0, 0)),
            ],
            out_specs=[
                pl.BlockSpec((tile_b, 2), lambda i: (i, 0)),
                pl.BlockSpec((tile_b, 1), lambda i: (i, 0)),
            ],
            scratch_shapes=[pltpu.VMEM((tile_b, 8), jnp.float32)],
        ),
        compiler_params=pltpu.CompilerParams(
            dimension_semantics=("parallel",)),        # v7x: shard batch over 2 TCs
        cost_estimate=pl.CostEstimate(
            flops=flops, transcendentals=0, bytes_accessed=bytes_accessed),
    )(x, w_slab, b_slab)

    if b_pad != B:
        logits, value = logits[:B], value[:B]
    return logits, value


def init_params(key):
    """nn.Linear-style init (uniform +-1/sqrt(fan_in)); natural PyTorch shapes."""
    def linear(key, fan_in, fan_out):
        kw, kb = jax.random.split(key)
        bound = 1.0 / jnp.sqrt(jnp.float32(fan_in))
        w = jax.random.uniform(kw, (fan_in, fan_out), jnp.float32, -bound, bound)
        b = jax.random.uniform(kb, (fan_out,), jnp.float32, -bound, bound)
        return w, b

    k1, k2, k3, k4 = jax.random.split(key, 4)
    w1, b1 = linear(k1, 4, 64)    # sync[0]
    w2, b2 = linear(k2, 64, 64)   # sync[2]
    wa, ba = linear(k3, 64, 2)    # actor
    wc, bc = linear(k4, 64, 1)    # critic
    return (w1, b1, w2, b2, wa, ba, wc, bc)


def pack_params(params):
    """Pack the 8 parameter arrays into one weight slab + one bias slab."""
    w1, b1, w2, b2, wa, ba, wc, bc = params
    w_slab = jnp.zeros((W_ROWS, 128), jnp.float32)
    w_slab = w_slab.at[0:4, 0:64].set(w1)
    w_slab = w_slab.at[8:72, 0:64].set(w2)
    w_slab = w_slab.at[136:200, 0:2].set(wa)
    w_slab = w_slab.at[136:200, 2:3].set(wc)

    b_slab = jnp.zeros((8, 128), jnp.float32)
    b_slab = b_slab.at[0, 0:64].set(b1)
    b_slab = b_slab.at[1, 0:64].set(b2)
    b_slab = b_slab.at[2, 0:2].set(ba)
    b_slab = b_slab.at[2, 2:3].set(bc)
    return w_slab, b_slab


def reference_forward(state, params):
    """Pure-JAX reference for correctness check."""
    w1, b1, w2, b2, wa, ba, wc, bc = params
    h1 = jnp.maximum(state @ w1 + b1, 0.0)
    h2 = jnp.maximum(h1 @ w2 + b2, 0.0)
    return h2 @ wa + ba, h2 @ wc + bc


if __name__ == "__main__":
    key = jax.random.PRNGKey(0)
    k_params, k_s1, k_s2 = jax.random.split(key, 3)

    params = init_params(k_params)
    packed = pack_params(params)

    # CartPole observation: 4-dim state; small batch.
    state = jax.random.normal(k_s1, (8, 4), dtype=jnp.float32)
    logits, value = actor_critic_forward(state, packed)
    jax.block_until_ready((logits, value))

    ref_logits, ref_value = reference_forward(state, params)
    assert logits.shape == (8, 2) and value.shape == (8, 1)
    assert jnp.allclose(logits, ref_logits, atol=1e-5, rtol=1e-5)
    assert jnp.allclose(value, ref_value, atol=1e-5, rtol=1e-5)

    # Larger batch: still a single grid step (per-step overhead minimized).
    state2 = jax.random.normal(k_s2, (200, 4), dtype=jnp.float32)
    logits2, value2 = actor_critic_forward(state2, packed)
    jax.block_until_ready((logits2, value2))
    ref_logits2, ref_value2 = reference_forward(state2, params)
    assert logits2.shape == (200, 2) and value2.shape == (200, 1)
    assert jnp.allclose(logits2, ref_logits2, atol=1e-5, rtol=1e-5)
    assert jnp.allclose(value2, ref_value2, atol=1e-5, rtol=1e-5)

    print("KERNEL_OK")
</pallas_src>

<mosaic_0001>
module attributes {stable_mosaic.version = 11 : i64} {
  func.func @actor_critic_kernel(%arg0: i32, %arg1: memref<8x4xf32, #tpu.memory_space<vmem>>, %arg2: memref<264x128xf32, #tpu.memory_space<vmem>>, %arg3: memref<8x128xf32, #tpu.memory_space<vmem>>, %arg4: memref<8x2xf32, #tpu.memory_space<vmem>>, %arg5: memref<8x1xf32, #tpu.memory_space<vmem>>, %arg6: memref<8x8xf32, #tpu.memory_space<vmem>>) attributes {dimension_semantics = [#tpu.dimension_semantics<parallel>], iteration_bounds = array<i64: 1>, scalar_prefetch = 0 : i64, scratch_operands = 1 : i64, tpu.core_type = #tpu.core_type<tc>, window_params = [{transform_indices = @transform_0, window_bounds = array<i64: 8, 4>}, {pipeline_mode = #tpu.pipeline_mode<synchronous>, transform_indices = @transform_1, window_bounds = array<i64: 264, 128>}, {pipeline_mode = #tpu.pipeline_mode<synchronous>, transform_indices = @transform_2, window_bounds = array<i64: 8, 128>}, {transform_indices = @transform_3, window_bounds = array<i64: 8, 2>}, {transform_indices = @transform_4, window_bounds = array<i64: 8, 1>}]} {
    %cst = arith.constant 0.000000e+00 : f32
    %0 = vector.broadcast %cst : f32 to vector<8x8xf32>
    %c0 = arith.constant 0 : index
    %c0_0 = arith.constant 0 : index
    %1 = vector.load %arg6[%c0, %c0_0] : memref<8x8xf32, #tpu.memory_space<vmem>>, vector<8x8xf32>
    tpu.vector_store %arg6[%c0, %c0_0], %0 {strides = array<i32>} : memref<8x8xf32, #tpu.memory_space<vmem>>, vector<8x8xf32>,
    %c0_1 = arith.constant 0 : index
    %c0_2 = arith.constant 0 : index
    %2 = vector.load %arg1[%c0_1, %c0_2] : memref<8x4xf32, #tpu.memory_space<vmem>>, vector<8x4xf32>
    %c0_3 = arith.constant 0 : index
    %c0_4 = arith.constant 0 : index
    %3 = vector.load %arg6[%c0_3, %c0_4] : memref<8x8xf32, #tpu.memory_space<vmem>>, vector<8x4xf32>
    tpu.vector_store %arg6[%c0_3, %c0_4], %2 {strides = array<i32>} : memref<8x8xf32, #tpu.memory_space<vmem>>, vector<8x4xf32>,
    %c0_5 = arith.constant 0 : index
    %c0_6 = arith.constant 0 : index
    %4 = vector.load %arg6[%c0_5, %c0_6] : memref<8x8xf32, #tpu.memory_space<vmem>>, vector<8x8xf32>
    %c0_7 = arith.constant 0 : index
    %c0_8 = arith.constant 0 : index
    %5 = vector.load %arg2[%c0_7, %c0_8] : memref<264x128xf32, #tpu.memory_space<vmem>>, vector<8x128xf32>
    %c8 = arith.constant 8 : index
    %c0_9 = arith.constant 0 : index
    %6 = vector.load %arg2[%c8, %c0_9] : memref<264x128xf32, #tpu.memory_space<vmem>>, vector<128x128xf32>
    %c136 = arith.constant 136 : index
    %c0_10 = arith.constant 0 : index
    %7 = vector.load %arg2[%c136, %c0_10] : memref<264x128xf32, #tpu.memory_space<vmem>>, vector<128x128xf32>
    %c0_11 = arith.constant 0 : index
    %c0_12 = arith.constant 0 : index
    %8 = vector.load %arg3[%c0_11, %c0_12] : memref<8x128xf32, #tpu.memory_space<vmem>>, vector<1x128xf32>
    %c1 = arith.constant 1 : index
    %c0_13 = arith.constant 0 : index
    %9 = vector.load %arg3[%c1, %c0_13] : memref<8x128xf32, #tpu.memory_space<vmem>>, vector<1x128xf32>
    %c2 = arith.constant 2 : index
    %c0_14 = arith.constant 0 : index
    %10 = vector.load %arg3[%c2, %c0_14] : memref<8x128xf32, #tpu.memory_space<vmem>>, vector<1x128xf32>
    %cst_15 = arith.constant dense<0.000000e+00> : vector<8x128xf32>
    %11 = tpu.matmul %4, %5, %cst_15 {dimension_numbers = #tpu.dot_dimension_numbers<[1], [0], [0], [1], [0, 0, 1, 1], [], []>} : vector<8x8xf32>, vector<8x128xf32>, vector<8x128xf32> -> vector<8x128xf32>
    %12 = vector.broadcast %8 : vector<1x128xf32> to vector<8x128xf32>
    %13 = arith.addf %11, %12 : vector<8x128xf32>
    %cst_16 = arith.constant 0.000000e+00 : f32
    %14 = vector.broadcast %cst_16 : f32 to vector<8x128xf32>
    %15 = arith.maximumf %13, %14 : vector<8x128xf32>
    %cst_17 = arith.constant dense<0.000000e+00> : vector<8x128xf32>
    %16 = tpu.matmul %15, %6, %cst_17 {dimension_numbers = #tpu.dot_dimension_numbers<[1], [0], [0], [1], [0, 0, 1, 1], [], []>} : vector<8x128xf32>, vector<128x128xf32>, vector<8x128xf32> -> vector<8x128xf32>
    %17 = vector.broadcast %9 : vector<1x128xf32> to vector<8x128xf32>
    %18 = arith.addf %16, %17 : vector<8x128xf32>
    %cst_18 = arith.constant 0.000000e+00 : f32
    %19 = vector.broadcast %cst_18 : f32 to vector<8x128xf32>
    %20 = arith.maximumf %18, %19 : vector<8x128xf32>
    %cst_19 = arith.constant dense<0.000000e+00> : vector<8x128xf32>
    %21 = tpu.matmul %20, %7, %cst_19 {dimension_numbers = #tpu.dot_dimension_numbers<[1], [0], [0], [1], [0, 0, 1, 1], [], []>} : vector<8x128xf32>, vector<128x128xf32>, vector<8x128xf32> -> vector<8x128xf32>
    %22 = vector.broadcast %10 : vector<1x128xf32> to vector<8x128xf32>
    %23 = arith.addf %21, %22 : vector<8x128xf32>
    %24 = vector.extract_strided_slice %23 {offsets = [0, 0], sizes = [8, 2], strides = [1, 1]} : vector<8x128xf32> to vector<8x2xf32>
    %c0_20 = arith.constant 0 : index
    %c0_21 = arith.constant 0 : index
    %25 = vector.load %arg4[%c0_20, %c0_21] : memref<8x2xf32, #tpu.memory_space<vmem>>, vector<8x2xf32>
    tpu.vector_store %arg4[%c0_20, %c0_21], %24 {strides = array<i32>} : memref<8x2xf32, #tpu.memory_space<vmem>>, vector<8x2xf32>,
    %26 = vector.extract_strided_slice %23 {offsets = [0, 2], sizes = [8, 1], strides = [1, 1]} : vector<8x128xf32> to vector<8x1xf32>
    %c0_22 = arith.constant 0 : index
    %c0_23 = arith.constant 0 : index
    %27 = vector.load %arg5[%c0_22, %c0_23] : memref<8x1xf32, #tpu.memory_space<vmem>>, vector<8x1xf32>
    tpu.vector_store %arg5[%c0_22, %c0_23], %26 {strides = array<i32>} : memref<8x1xf32, #tpu.memory_space<vmem>>, vector<8x1xf32>,
    return
  }
  func.func @transform_0(%arg0: i32) -> (i32, i32) {
    %c0_i32 = arith.constant 0 : i32
    %c0_i32_0 = arith.constant 0 : i32
    return %arg0, %c0_i32 : i32, i32
  }
  func.func @transform_1(%arg0: i32) -> (i32, i32) {
    %c0_i32 = arith.constant 0 : i32
    %c0_i32_0 = arith.constant 0 : i32
    %c0_i32_1 = arith.constant 0 : i32
    return %c0_i32, %c0_i32_0 : i32, i32
  }
  func.func @transform_2(%arg0: i32) -> (i32, i32) {
    %c0_i32 = arith.constant 0 : i32
    %c0_i32_0 = arith.constant 0 : i32
    %c0_i32_1 = arith.constant 0 : i32
    return %c0_i32, %c0_i32_0 : i32, i32
  }
  func.func @transform_3(%arg0: i32) -> (i32, i32) {
    %c0_i32 = arith.constant 0 : i32
    %c0_i32_0 = arith.constant 0 : i32
    return %arg0, %c0_i32 : i32, i32
  }
  func.func @transform_4(%arg0: i32) -> (i32, i32) {
    %c0_i32 = arith.constant 0 : i32
    %c0_i32_0 = arith.constant 0 : i32
    return %arg0, %c0_i32 : i32, i32
  }
}

</mosaic_0001>

<bundles_post_ra>
// kernel: tpu_custom_call.1
= control target key start
LH: loop header
LB: loop body
LE: loop exit
PB: predicated region body
PF: predicated region fallthrough
CT: control target
= control target key end

     0   :  { %10 = vsyncpa [#allocation4], 0  ;;  %s510_s15 = smov [#allocation3]   ;;  %s593_s0 = inlined_call_operand.vmem [shape: f32[8,4], index: 0, kind: input, shape index: {}]   ;;  %s594_s1 = inlined_call_operand.hbm [shape: f32[264,128], index: 1, kind: input, shape index: {}]   ;;  %s595_s2 = inlined_call_operand.vmem [shape: f32[8,128], index: 2, kind: input, shape index: {}]   ;;  %s596_s3 = inlined_call_operand.vmem [shape: f32[8,2], index: 3, kind: output, shape index: {0}]   ;;  %s597_s4 = inlined_call_operand.vmem [shape: f32[8,1], index: 4, kind: output, shape index: {1}]  }
   0x1   :  { %s18_s16 = sshll.u32 %s510_s15, 4  ;;  %s486_s19 = scalar_lea.hbm %s594_s1, 4224  ;;  %s19_s16 = int_to_ptr.vmem [resolvable:$true] %s18_s16 }
   0x2   :  { %p487_p0 = scmp.ne.s32.totalorder %s594_s1, %s486_s19  ;;  %p490_p1 = scmp.lt.u32.totalorder %s486_s19, %s594_s1 }
   0x4   :  { %p492_p2 = pnand %p490_p1, %p487_p0 }
   0x6   :  { %495 = shalt.err (!%p492_p2)
}
   0x7   :  { %s496_s24 = scalar_lea.vmem %s19_s16, 4224  ;;  %p501_p4 = scmp.lt.s32.totalorder %s19_s16, %s19_s16 }
   0x8   :  { %p497_p3 = scmp.ne.s32.totalorder %s19_s16, %s496_s24  ;;  %p502_p5 = scmp.lt.s32.totalorder %s496_s24, %s496_s24 }
   0xa   :  { %p503_p6 = por %p502_p5, %p501_p4 }
   0xc   :  { %p504_p7 = pnand %p503_p6, %p497_p3 }
   0xe   :  { %507 = shalt.err (!%p504_p7)
}
   0xf   :  { %s511_s25 = smov 128   ;;  %s512_s26 = smov 8  }
  0x10   :  { %24 = dma.hbm_to_vmem [thread:$0]  %s594_s1, 4224, %s19_s16, [#allocation4], %s511_s25, %s511_s25, %s512_s26  }
  0x11   :  { %508 = dma.done.wait [#allocation4], 4224  }
  0x12   :  { %509 = vsyncadd [#allocation4], 4294963072  ;;  %vm30_vm0 = vcmask 64512   ;;  %v513_v0 = vmov 0.0   ;;  %vm514_vm1 = vmmov 0   ;;  %v515_v1 = vmov 0.0|0.0  }
  0x13   :  { %356 = vmatprep.subr.mxu0 %v513_v0  ;;  %358 = vmatprep.mubr.msk.f32.mxu0 %vm514_vm1, %v513_v0  ;;  %31 = vst.msk [vmem:[#allocation2] sm:$0xff] %vm30_vm0, %v513_v0  ;;  %vm33_vm2 = vcmask 31744   ;;  %v36_v2 = vld [vmem:[#allocation3] sm:$0xff]  ;;  %v32_v3 = vld [vmem:[%s593_s0] sm:$0xff]  ;;  %v37_v4 = vld [vmem:[#allocation3 + $0x8] sm:$0xff]  ;;  %vm299_vm3 = vcmask 15360  }
  0x14   :  { %431 = vmatprep.subr.bf16.mxu1 %v515_v1  ;;  %393 = vmatprep.mubr.msk.f32.mxu1 %vm514_vm1, %v513_v0  ;;  %34 = vst.msk [vmem:[#allocation2] sm:$0xff] %vm33_vm2, %v32_v3  ;;  %v38_v5 = vld [vmem:[#allocation3 + $0x10] sm:$0xff]  ;;  %v39_v6 = vld [vmem:[#allocation3 + $0x18] sm:$0xff]  ;;  %v40_v7 = vld [vmem:[#allocation3 + $0x20] sm:$0xff]  ;;  %s516_s11 = smov 126   ;;  %vm305_vm4 = vcmask 7168  }
  0x15   :  { %357 = vmatpush3.msra.mxu0 %v36_v2  ;;  %v432_v8 = vpack.c.bf16 %v38_v5, %v37_v4  ;;  %v435_v9 = vpack.c.bf16 %v40_v7, %v39_v6  ;;  %v41_v10 = vld [vmem:[#allocation3 + $0x28] sm:$0xff]  ;;  %v42_v11 = vld [vmem:[#allocation3 + $0x30] sm:$0xff]  ;;  %v43_v14 = vld [vmem:[#allocation3 + $0x38] sm:$0xff] }
  0x16   :  { %455 = vmatprep.subr.bf16.mxu0 %v515_v1  ;;  %v438_v13 = vpack.c.bf16 %v42_v11, %v41_v10  ;;  %v44_v15 = vld [vmem:[#allocation3 + $0x40] sm:$0xff]  ;;  %v45_v17 = vld [vmem:[#allocation3 + $0x48] sm:$0xff]  ;;  %v46_v18 = vld [vmem:[#allocation3 + $0x50] sm:$0xff] }
  0x17   :  { %433 = vmatpush3.bf16.msra.mxu1 %v432_v8  ;;  %v441_v16 = vpack.c.bf16 %v44_v15, %v43_v14  ;;  %v444_v19 = vpack.c.bf16 %v46_v18, %v45_v17  ;;  %v47_v20 = vld [vmem:[#allocation3 + $0x58] sm:$0xff]  ;;  %v48_v21 = vld [vmem:[#allocation3 + $0x60] sm:$0xff]  ;;  %v49_v23 = vld [vmem:[#allocation3 + $0x68] sm:$0xff] }
  0x18   :  { %434 = vmatprep.subr.bf16.mxu1 %v515_v1  ;;  %v447_v22 = vpack.c.bf16 %v48_v21, %v47_v20  ;;  %v50_v24 = vld [vmem:[#allocation3 + $0x70] sm:$0xff]  ;;  %v51_v26 = vld [vmem:[#allocation3 + $0x78] sm:$0xff]  ;;  %v52_v27 = vld [vmem:[#allocation3 + $0x80] sm:$0xff] }
  0x19   :  { %v450_v25 = vpack.c.bf16 %v50_v24, %v49_v23  ;;  %v453_v28 = vpack.c.bf16 %v52_v27, %v51_v26  ;;  %v53_v29 = vld [vmem:[#allocation3 + $0x88] sm:$0xff]  ;;  %v54_v30 = vld [vmem:[#allocation3 + $0x90] sm:$0xff]  ;;  %v55_v31 = vld [vmem:[#allocation3 + $0x98] sm:$0xff] }
  0x1a   :  { %v456_v32 = vpack.c.bf16 %v54_v30, %v53_v29  ;;  %v56_v33 = vld [vmem:[#allocation3 + $0xa0] sm:$0xff]  ;;  %v57_v35 = vld [vmem:[#allocation3 + $0xa8] sm:$0xff]  ;;  %v58_v36 = vld [vmem:[#allocation3 + $0xb0] sm:$0xff] }
  0x1b   :  { %v35_v12 = vld [vmem:[#allocation2] sm:$0xff]  ;;  %436 = vmatpush3.bf16.msra.mxu1 %v435_v9  ;;  %v459_v34 = vpack.c.bf16 %v56_v33, %v55_v31  ;;  %v462_v37 = vpack.c.bf16 %v58_v36, %v57_v35  ;;  %v60_v39 = vld [vmem:[#allocation3 + $0xc0] sm:$0xff]  ;;  %v61_v41 = vld [vmem:[#allocation3 + $0xc8] sm:$0xff] }
  0x1c   :  { %359 = vmatmul.mubr.msk.f32.vlgmr.msra.gmra.mrb[0].mxu0 %vm30_vm0, %v35_v12  ;;  %437 = vmatprep.subr.bf16.mxu1 %v515_v1  ;;  %v59_v38 = vld [vmem:[#allocation3 + $0xb8] sm:$0xff]  ;;  %v62_v42 = vld [vmem:[#allocation3 + $0xd0] sm:$0xff]  ;;  %v64_v45 = vld [vmem:[#allocation3 + $0xe0] sm:$0xff] }
  0x1d   :  { %428 = vmatprep.mubr.msk.f32.mxu0 %vm514_vm1, %v513_v0  ;;  %457 = vmatpush3.bf16.msra.mxu0 %v456_v32  ;;  %v465_v40 = vpack.c.bf16 %v60_v39, %v59_v38  ;;  %v468_v43 = vpack.c.bf16 %v62_v42, %v61_v41  ;;  %v63_v44 = vld [vmem:[#allocation3 + $0xd8] sm:$0xff]  ;;  %v65_v47 = vld [vmem:[#allocation3 + $0xe8] sm:$0xff]  ;;  %v66_v48 = vld [vmem:[#allocation3 + $0xf0] sm:$0xff] }
  0x1e   :  { %458 = vmatprep.subr.bf16.mxu0 %v515_v1  ;;  %v471_v46 = vpack.c.bf16 %v64_v45, %v63_v44  ;;  %v474_v49 = vpack.c.bf16 %v66_v48, %v65_v47  ;;  %v316_v50 = vld [vmem:[%s595_s2] ss:$0 sm:$0xff]  ;;  %v68_v56 = vld [vmem:[#allocation3 + $0x100] sm:$0xff]  ;;  %v318_v58 = vld [vmem:[%s595_s2 + $0x1] ss:$0 sm:$0xff] }
  0x1f   :  { %439 = vmatpush3.bf16.msra.mxu1 %v438_v13  ;;  %v67_v55 = vld [vmem:[#allocation3 + $0xf8] sm:$0xff] }
  0x20   :  { %440 = vmatprep.subr.bf16.mxu1 %v515_v1  ;;  %v477_v57 = vpack.c.bf16 %v68_v56, %v67_v55  ;;  %v319_v63 = vld [vmem:[%s595_s2 + $0x2] ss:$0 sm:$0xff] }
  0x21   :  { %460 = vmatpush3.bf16.msra.mxu0 %v459_v34 }
  0x22   :  { %461 = vmatprep.subr.bf16.mxu0 %v515_v1 }
  0x23   :  { %442 = vmatpush3.bf16.msra.mxu1 %v441_v16 }
  0x24   :  { %443 = vmatprep.subr.bf16.mxu1 %v515_v1 }
  0x25   :  { %463 = vmatpush3.bf16.msra.mxu0 %v462_v37 }
  0x26   :  { %464 = vmatprep.subr.bf16.mxu0 %v515_v1 }
  0x27   :  { %445 = vmatpush3.bf16.msra.mxu1 %v444_v19 }
  0x28   :  { %446 = vmatprep.subr.bf16.mxu1 %v515_v1 }
  0x29   :  { %466 = vmatpush3.bf16.msra.mxu0 %v465_v40 }
  0x2a   :  { %467 = vmatprep.subr.bf16.mxu0 %v515_v1 }
  0x2b   :  { %448 = vmatpush3.bf16.msra.mxu1 %v447_v22 }
  0x2c   :  { %449 = vmatprep.subr.bf16.mxu1 %v515_v1 }
  0x2d   :  { %469 = vmatpush3.bf16.msra.mxu0 %v468_v43 }
  0x2e   :  { %470 = vmatprep.subr.bf16.mxu0 %v515_v1 }
  0x2f   :  { %451 = vmatpush3.bf16.msra.mxu1 %v450_v25 }
  0x30   :  { %452 = vmatprep.subr.bf16.mxu1 %v515_v1 }
  0x31   :  { %472 = vmatpush3.bf16.msra.mxu0 %v471_v46 }
  0x32   :  { %473 = vmatprep.subr.bf16.mxu0 %v515_v1 }
  0x33   :  { %454 = vmatpush3.bf16.msra.mxu1 %v453_v28 }
  0x35   :  { %475 = vmatpush3.bf16.msra.mxu0 %v474_v49 }
  0x36   :  { %476 = vmatprep.subr.bf16.mxu0 %v515_v1 }
  0x39   :  { %478 = vmatpush3.bf16.msra.mxu0 %v477_v57 }
  0xef   :  { %v145_v51 = vpop.f32.mrb[0].mxu0 }
  0xf0   :  { %v146_v52 = vadd.f32 %v316_v50, %v145_v51  ;;  %v360_v53 = vpop.f32.mrb[1].mxu0 }
  0xf2   :  { %v149_v54 = vmax.f32 %v146_v52, 0.0 }
  0xf4   :  { %394 = vmatmul.mubr.f32.vlgmr.msra.gmra.mrb[0].mxu1 %v149_v54 }
 0x1c7   :  { %v220_v59 = vpop.f32.mrb[0].mxu1 }
 0x1c8   :  { %v221_v60 = vadd.f32 %v318_v58, %v220_v59  ;;  %v395_v61 = vpop.f32.mrb[1].mxu1 }
 0x1ca   :  { %v224_v62 = vmax.f32 %v221_v60, 0.0 }
 0x1cc   :  { %429 = vmatmul.mubr.f32.vlgmr.msra.gmra.mrb[2].mxu0 %v224_v62 }
 0x29f   :  { %v295_v0 = vpop.f32.mrb[2].mxu0 }
 0x2a0   :  { %v296_v1 = vadd.f32 %v319_v63, %v295_v0  ;;  %v430_v2 = vpop.f32.mrb[3].mxu0 }
 0x2a2   :  { %300 = vst.msk [vmem:[%s596_s3] sm:$0xff] %vm299_vm3, %v296_v1  ;;  %302 = vrot.lane.b32.xlu0 %v296_v1, %s516_s11 }
 0x314   :  { %v303_v3 = vpop.permute.xlu0 %302 }
 0x315   :  { %306 = vst.msk [vmem:[%s597_s4] sm:$0xff] %vm305_vm4, %v303_v3 }
 0x316   :  { %315 = vsyncpa [#allocation4], 1 }

</bundles_post_ra>
